<compile_context>
chip_gen: v7x
topology: tpu7x:2x2x1
jax: 0.10.0
libtpu: 0.0.40
codegen_flags: <defaults>
</compile_context>

<pallas_src>
import functools

import jax
import jax.numpy as jnp
from jax.experimental import pallas as pl
from jax.experimental.pallas import tpu as pltpu


_LT_MAX = 32768                          # lane-tile cap (elements)
_BLOCK_TARGET_BYTES = 4 * 1024 * 1024    # ~4 MiB per input block
_MIN_GRID_STEPS = 8                      # keep both v7x TensorCores fed


def _pick_lane_tile(L, C, N, itemsize):
    """Lane tile for the flattened Hh*Wh axis.

    Returns a multiple of 128 (or L itself), sized for ~4 MiB input blocks,
    preferring exact divisors of L (no masked edge tile) and enough grid
    steps to split across v7x's two TensorCores.
    """
    bytes_per_lane = 4 * C * itemsize
    cap = (_BLOCK_TARGET_BYTES // bytes_per_lane) // 128 * 128
    cap = max(128, min(_LT_MAX, cap))

    if L <= cap:
        # Full L is always legal; also consider splitting a large-but-fitting
        # L so the parallel grid has enough steps for two cores.
        cands = [L] + [d for d in range(128, L, 128) if L % d == 0]
    else:
        cands = [d for d in range(128, cap + 1, 128) if L % d == 0]
        if not cands:
            cands = [cap]                # ragged last tile (masked edge only)

    def steps(lt):
        return N * ((L + lt - 1) // lt)

    good = [lt for lt in cands if steps(lt) >= _MIN_GRID_STEPS]
    return max(good) if good else max(cands)


def _dwt_kernel(xs_ref, o_ref, *, C):
    # xs_ref block: (1, 4*C, lt); four sublane slabs of C channels each,
    # parity index p = 2*row_parity + col_parity.
    a = xs_ref[0, 0 * C:1 * C, :]   # x[2i,   2j  ]
    c = xs_ref[0, 1 * C:2 * C, :]   # x[2i,   2j+1]
    b = xs_ref[0, 2 * C:3 * C, :]   # x[2i+1, 2j  ]
    d = xs_ref[0, 3 * C:4 * C, :]   # x[2i+1, 2j+1]

    # Separable Haar butterfly (the module's /2 folded into stage one):
    # 4 mul + 8 add per 2x2 quad.
    s0 = (a + b) * 0.5
    s1 = (c + d) * 0.5
    d0 = (b - a) * 0.5
    d1 = (d - c) * 0.5

    o_ref[0, 0 * C:1 * C, :] = s0 + s1   # LL
    o_ref[0, 1 * C:2 * C, :] = s1 - s0   # HL
    o_ref[0, 2 * C:3 * C, :] = d0 + d1   # LH
    o_ref[0, 3 * C:4 * C, :] = d1 - d0   # HH


@jax.jit
def dwt(x):
    """Pallas implementation of the PyTorch DWT.forward (NCHW layout)."""
    N, C, H, W = x.shape
    if H < 2 or W < 2:
        # Mirrors the PyTorch module's early passthrough.
        return x
    if H % 2 != 0 or W % 2 != 0:
        raise ValueError(f"DWT requires even H and W, got H={H}, W={W}")

    Hh, Wh = H // 2, W // 2
    L = Hh * Wh

    # Single polyphase gather pass (the only non-kernel HBM pass):
    # xs[n, p*C + c, i*Wh + j] = x[n, c, 2i + p//2, 2j + p%2].
    # The reshapes are free views; the transpose is the one XLA data pass.
    xs = (x.reshape(N, C, Hh, 2, Wh, 2)
            .transpose(0, 3, 5, 1, 2, 4)
            .reshape(N, 4 * C, L))

    itemsize = jnp.dtype(x.dtype).itemsize
    lt = _pick_lane_tile(L, C, N, itemsize)
    grid = (N, (L + lt - 1) // lt)

    # Parity is folded into the sublane axis (4C rows), so even C=3/4 inputs
    # give dense vregs and unmasked stores; lane axis lt is a 128-multiple
    # (or full L), so writebacks are full-width vst.
    spec = pl.BlockSpec((1, 4 * C, lt), lambda n, li: (n, 0, li))
    # (pl.Buffered(3) on the input spec is a possible few-% v7x win if xprof
    #  shows exposed DMA waits between steps; default double-buffering here.)

    cost = pl.CostEstimate(
        flops=3 * x.size,                       # 12 VALU ops per 2x2 quad
        transcendentals=0,
        bytes_accessed=2 * x.size * itemsize,   # read xs once, write out once
    )

    out = pl.pallas_call(
        functools.partial(_dwt_kernel, C=C),
        out_shape=jax.ShapeDtypeStruct((N, 4 * C, L), x.dtype),
        grid=grid,
        in_specs=[spec],
        out_specs=spec,
        compiler_params=pltpu.CompilerParams(
            dimension_semantics=("parallel", "parallel"),
            vmem_limit_bytes=32 * 1024 * 1024,
        ),
        cost_estimate=cost,
    )(xs)

    # Free reshape back to the module's (N, 4C, Hh, Wh) layout; channel blocks
    # come out ordered [LL, HL, LH, HH], each of width C.
    return out.reshape(N, 4 * C, Hh, Wh)


def _dwt_reference(x):
    """Pure-JAX reference mirroring the PyTorch module exactly."""
    h, w = x.shape[2], x.shape[3]
    if h < 2 or w < 2:
        return x
    x01 = x[:, :, 0::2, :] / 2
    x02 = x[:, :, 1::2, :] / 2
    x1 = x01[:, :, :, 0::2]
    x2 = x02[:, :, :, 0::2]
    x3 = x01[:, :, :, 1::2]
    x4 = x02[:, :, :, 1::2]
    x_LL = x1 + x2 + x3 + x4
    x_HL = -x1 - x2 + x3 + x4
    x_LH = -x1 + x2 - x3 + x4
    x_HH = x1 - x2 - x3 + x4
    return jnp.concatenate((x_LL, x_HL, x_LH, x_HH), axis=1)


if __name__ == "__main__":
    key = jax.random.PRNGKey(0)
    x = jax.random.normal(key, (2, 4, 16, 16), dtype=jnp.float32)

    out = jax.block_until_ready(dwt(x))
    ref = _dwt_reference(x)

    assert out.shape == (2, 16, 8, 8), out.shape
    assert out.dtype == ref.dtype
    # Kernel uses the separable butterfly (different FP association than the
    # left-to-right reference), so allow a couple of ulps of slack.
    assert jnp.allclose(out, ref, rtol=1e-5, atol=1e-6), "mismatch vs reference"

    print("KERNEL_OK")
</pallas_src>

<mosaic_0001>
module attributes {stable_mosaic.version = 11 : i64} {
  func.func @_dwt_kernel(%arg0: i32, %arg1: i32, %arg2: memref<1x16x64xf32, #tpu.memory_space<vmem>>, %arg3: memref<1x16x64xf32, #tpu.memory_space<vmem>>) attributes {dimension_semantics = [#tpu.dimension_semantics<parallel>, #tpu.dimension_semantics<parallel>], iteration_bounds = array<i64: 2, 1>, scalar_prefetch = 0 : i64, scratch_operands = 0 : i64, tpu.core_type = #tpu.core_type<tc>, window_params = [{transform_indices = @transform_0, window_bounds = array<i64: 1, 16, 64>}, {transform_indices = @transform_1, window_bounds = array<i64: 1, 16, 64>}]} {
    %c0 = arith.constant 0 : index
    %c0_0 = arith.constant 0 : index
    %c0_1 = arith.constant 0 : index
    %0 = vector.load %arg2[%c0, %c0_0, %c0_1] : memref<1x16x64xf32, #tpu.memory_space<vmem>>, vector<1x4x64xf32>
    %1 = vector.shape_cast %0 : vector<1x4x64xf32> to vector<4x64xf32>
    %c0_2 = arith.constant 0 : index
    %c4 = arith.constant 4 : index
    %c0_3 = arith.constant 0 : index
    %2 = vector.load %arg2[%c0_2, %c4, %c0_3] : memref<1x16x64xf32, #tpu.memory_space<vmem>>, vector<1x4x64xf32>
    %3 = vector.shape_cast %2 : vector<1x4x64xf32> to vector<4x64xf32>
    %c0_4 = arith.constant 0 : index
    %c8 = arith.constant 8 : index
    %c0_5 = arith.constant 0 : index
    %4 = vector.load %arg2[%c0_4, %c8, %c0_5] : memref<1x16x64xf32, #tpu.memory_space<vmem>>, vector<1x4x64xf32>
    %5 = vector.shape_cast %4 : vector<1x4x64xf32> to vector<4x64xf32>
    %c0_6 = arith.constant 0 : index
    %c12 = arith.constant 12 : index
    %c0_7 = arith.constant 0 : index
    %6 = vector.load %arg2[%c0_6, %c12, %c0_7] : memref<1x16x64xf32, #tpu.memory_space<vmem>>, vector<1x4x64xf32>
    %7 = vector.shape_cast %6 : vector<1x4x64xf32> to vector<4x64xf32>
    %8 = arith.addf %1, %5 : vector<4x64xf32>
    %cst = arith.constant 5.000000e-01 : f32
    %9 = vector.broadcast %cst : f32 to vector<4x64xf32>
    %10 = arith.mulf %8, %9 : vector<4x64xf32>
    %11 = arith.addf %3, %7 : vector<4x64xf32>
    %cst_8 = arith.constant 5.000000e-01 : f32
    %12 = vector.broadcast %cst_8 : f32 to vector<4x64xf32>
    %13 = arith.mulf %11, %12 : vector<4x64xf32>
    %14 = arith.subf %5, %1 : vector<4x64xf32>
    %cst_9 = arith.constant 5.000000e-01 : f32
    %15 = vector.broadcast %cst_9 : f32 to vector<4x64xf32>
    %16 = arith.mulf %14, %15 : vector<4x64xf32>
    %17 = arith.subf %7, %3 : vector<4x64xf32>
    %cst_10 = arith.constant 5.000000e-01 : f32
    %18 = vector.broadcast %cst_10 : f32 to vector<4x64xf32>
    %19 = arith.mulf %17, %18 : vector<4x64xf32>
    %20 = arith.addf %10, %13 : vector<4x64xf32>
    %c0_11 = arith.constant 0 : index
    %c0_12 = arith.constant 0 : index
    %c0_13 = arith.constant 0 : index
    %21 = vector.load %arg3[%c0_11, %c0_12, %c0_13] : memref<1x16x64xf32, #tpu.memory_space<vmem>>, vector<1x4x64xf32>
    %22 = vector.shape_cast %21 : vector<1x4x64xf32> to vector<4x64xf32>
    %23 = vector.shape_cast %20 : vector<4x64xf32> to vector<1x4x64xf32>
    tpu.vector_store %arg3[%c0_11, %c0_12, %c0_13], %23 {strides = array<i32>} : memref<1x16x64xf32, #tpu.memory_space<vmem>>, vector<1x4x64xf32>,
    %24 = arith.subf %13, %10 : vector<4x64xf32>
    %c0_14 = arith.constant 0 : index
    %c4_15 = arith.constant 4 : index
    %c0_16 = arith.constant 0 : index
    %25 = vector.load %arg3[%c0_14, %c4_15, %c0_16] : memref<1x16x64xf32, #tpu.memory_space<vmem>>, vector<1x4x64xf32>
    %26 = vector.shape_cast %25 : vector<1x4x64xf32> to vector<4x64xf32>
    %27 = vector.shape_cast %24 : vector<4x64xf32> to vector<1x4x64xf32>
    tpu.vector_store %arg3[%c0_14, %c4_15, %c0_16], %27 {strides = array<i32>} : memref<1x16x64xf32, #tpu.memory_space<vmem>>, vector<1x4x64xf32>,
    %28 = arith.addf %16, %19 : vector<4x64xf32>
    %c0_17 = arith.constant 0 : index
    %c8_18 = arith.constant 8 : index
    %c0_19 = arith.constant 0 : index
    %29 = vector.load %arg3[%c0_17, %c8_18, %c0_19] : memref<1x16x64xf32, #tpu.memory_space<vmem>>, vector<1x4x64xf32>
    %30 = vector.shape_cast %29 : vector<1x4x64xf32> to vector<4x64xf32>
    %31 = vector.shape_cast %28 : vector<4x64xf32> to vector<1x4x64xf32>
    tpu.vector_store %arg3[%c0_17, %c8_18, %c0_19], %31 {strides = array<i32>} : memref<1x16x64xf32, #tpu.memory_space<vmem>>, vector<1x4x64xf32>,
    %32 = arith.subf %19, %16 : vector<4x64xf32>
    %c0_20 = arith.constant 0 : index
    %c12_21 = arith.constant 12 : index
    %c0_22 = arith.constant 0 : index
    %33 = vector.load %arg3[%c0_20, %c12_21, %c0_22] : memref<1x16x64xf32, #tpu.memory_space<vmem>>, vector<1x4x64xf32>
    %34 = vector.shape_cast %33 : vector<1x4x64xf32> to vector<4x64xf32>
    %35 = vector.shape_cast %32 : vector<4x64xf32> to vector<1x4x64xf32>
    tpu.vector_store %arg3[%c0_20, %c12_21, %c0_22], %35 {strides = array<i32>} : memref<1x16x64xf32, #tpu.memory_space<vmem>>, vector<1x4x64xf32>,
    return
  }
  func.func @transform_0(%arg0: i32, %arg1: i32) -> (i32, i32, i32) {
    %c0_i32 = arith.constant 0 : i32
    %c0_i32_0 = arith.constant 0 : i32
    return %arg0, %c0_i32, %arg1 : i32, i32, i32
  }
  func.func @transform_1(%arg0: i32, %arg1: i32) -> (i32, i32, i32) {
    %c0_i32 = arith.constant 0 : i32
    %c0_i32_0 = arith.constant 0 : i32
    return %arg0, %c0_i32, %arg1 : i32, i32, i32
  }
}

</mosaic_0001>

<bundles_post_ra>
// kernel: dwt.1
= control target key start
LH: loop header
LB: loop body
LE: loop exit
PB: predicated region body
PF: predicated region fallthrough
CT: control target
= control target key end

     0   :  { %s323_s6 = smov 0   ;;  %s325_s7 = smov 0   ;;  %s356_s0 = inlined_call_operand.vmem [shape: f32[2,16,64], index: 0, kind: input, shape index: {}]   ;;  %s357_s1 = inlined_call_operand.vmem [shape: f32[2,16,64], index: 1, kind: output, shape index: {}]  }
   0x1   :  { %s327_s8 = smov 0  }
   0x2 LB: > { %s23_s9 = sadd.s32 1, %s307_s7  ;;  %p256_p0 = scmp.ge.s32.totalorder %s311_s8, 1  ;;  %s311_s8 = sphi %s327_s8, %s11_s8   ;;  %s307_s7 = sphi %s325_s7, %s359_s7   ;;  %s303_s6 = sphi %s323_s6, %s358_s6  }
   0x3   : > { %p25_p1 = scmp.ge.s32.totalorder %s23_s9, 2  ;;  %p106_p2 = scmp.lt.s32.totalorder %s311_s8, 3 }
   0x5   : > { %s361_s9 = smov (%p25_p1, %s23_s9), 0  ;;  %p107_p3 = pnand %p256_p0, %p106_p2 }
   0x6   : > { %p132_p4 = scmp.lt.s32.totalorder (!%p107_p3), %s303_s6, 1  ;;  %vm161_vm0 = vcmask (!%p107_p3), 519168  }
   0x7   : > { %110 = sbr.rel (%p107_p3) target bundleno = 27 (0x1b), region = 24 }
   0xe   : > { %s363_s6 = smov (!%p132_p4, %s303_s6), 1 }
   0xf   : > { %s263_s10 = sshll.u32 %s363_s6, 4 }
  0x10   : > { %s139_s13 = scalar_lea.vmem %s356_s0, %s263_s10  ;;  %s147_s16 = scalar_lea.vmem %s357_s1, %s263_s10 }
  0x11   : > { %v148_v0 = vld [vmem:[%s139_s13] sm:$0xf]  ;;  %v149_v1 = vld [vmem:[%s139_s13 + $0x4] sm:$0xf]  ;;  %v150_v2 = vld [vmem:[%s139_s13 + $0x8] sm:$0xf] }
  0x12   : > { %v151_v3 = vld [vmem:[%s139_s13 + $0xc] sm:$0xf]  ;;  %v152_v4 = vadd.f32 %v150_v2, %v148_v0  ;;  %v156_v5 = vsub.f32 %v150_v2, %v148_v0 }
  0x13   : > { %v154_v6 = vadd.f32 %v151_v3, %v149_v1  ;;  %v158_v7 = vsub.f32 %v151_v3, %v149_v1 }
  0x14   : > { %v153_v8 = vmul.f32 0.5, %v152_v4  ;;  %v157_v9 = vmul.f32 0.5, %v156_v5 }
  0x15   : > { %v155_v10 = vmul.f32 0.5, %v154_v6  ;;  %v159_v11 = vmul.f32 0.5, %v158_v7 }
  0x17   : > { %v160_v12 = vadd.f32 %v155_v10, %v153_v8  ;;  %v163_v13 = vsub.f32 %v155_v10, %v153_v8  ;;  %v165_v14 = vadd.f32 %v159_v11, %v157_v9  ;;  %v167_v15 = vsub.f32 %v159_v11, %v157_v9 }
  0x19   : > { %162 = vst.msk [vmem:[%s147_s16] sm:$0xf] %vm161_vm0, %v160_v12  ;;  %164 = vst.msk [vmem:[%s147_s16 + $0x4] sm:$0xf] %vm161_vm0, %v163_v13 }
  0x1a   : > { %166 = vst.msk [vmem:[%s147_s16 + $0x8] sm:$0xf] %vm161_vm0, %v165_v14  ;;  %168 = vst.msk [vmem:[%s147_s16 + $0xc] sm:$0xf] %vm161_vm0, %v167_v15 }
  0x1b PF: > { %s11_s8 = sadd.s32 1, %s311_s8   ;;  %s358_s6 = smov %s307_s7 }
  0x1c   : > { %p8_p5 = scmp.ge.s32.totalorder %s11_s8, 4   ;;  %s359_s7 = smov %s361_s9 }
  0x1e   :  { %10 = sbr.rel (!%p8_p5) target bundleno = 2 (0x2), region = 54 }

</bundles_post_ra>
